<compile_context>
chip_gen: v7x
topology: tpu7x:2x2x1
jax: 0.10.0
libtpu: 0.0.40
codegen_flags: <defaults>
</compile_context>

<pallas_src>
import functools

import numpy as np
import jax
import jax.numpy as jnp
from jax.experimental import pallas as pl
from jax.experimental.pallas import tpu as pltpu

_LANE = 128  # fixed lane width: full-lane stores, contiguous HBM blocks, one compiled variant


def _round_up(a, b):
    return -(-a // b) * b


def _log_gamma_kernel(params_ref, x_ref, o_ref):
    # params_ref (SMEM, scalar-prefetched, shape (3,)): [alpha - 1, beta, c0]
    #   c0 = alpha*log(beta) + lgamma(alpha), computed once in the wrapper.
    alpha_m1 = params_ref[0]
    beta = params_ref[1]
    c0 = params_ref[2]
    x = x_ref[...]
    o_ref[...] = c0 + alpha_m1 * jnp.log(x) - beta * x


@functools.lru_cache(maxsize=1)
def _chip_config():
    """Chip-aware tile target / VMEM limit / dual-TensorCore flag."""
    vmem_bytes = None
    try:
        info = pltpu.get_tpu_info()
        vmem_bytes = getattr(info, "vmem_capacity_bytes", None)
    except Exception:
        vmem_bytes = None
    if vmem_bytes is None:
        vmem_bytes = 64 * 2**20  # conservative fallback: assume v7x-like per-TC VMEM
    if vmem_bytes >= 100 * 2**20:
        # v5e / v6e: 128 MiB VMEM, single TensorCore -> big tiles, no forced split.
        return {"tile_bytes": 8 * 2**20, "vmem_limit": 96 * 2**20, "dual_tc": False}
    # v7x-like: 64 MiB VMEM per TC, 2 TensorCores -> smaller tiles, capped live footprint.
    return {"tile_bytes": 4 * 2**20, "vmem_limit": 56 * 2**20, "dual_tc": True}


def _pick_tile_rows(rows, cfg):
    """Rows per block for a (rows, 128) f32 array."""
    max_tile_rows = max(8, (cfg["tile_bytes"] // (_LANE * 4)) // 8 * 8)
    if rows <= max_tile_rows:
        tile_rows = rows  # one full-extent block, grid = 1 (fine on single-TC chips)
    else:
        tile_rows = max_tile_rows
    if cfg["dual_tc"] and rows * _LANE * 4 >= 32 * 2**20:
        # v7x: aim for an even step count >= 8 so each of the two TensorCores gets
        # >= 4 steps and keeps its prefetch/compute overlap.
        steps = max(8, pl.cdiv(rows, max_tile_rows))
        steps += steps % 2
        tile_rows = min(max_tile_rows, _round_up(pl.cdiv(rows, steps), 8))
    return tile_rows


def _log_gamma_pallas(x2d, params, tile_rows, vmem_limit):
    rows = x2d.shape[0]
    grid = (pl.cdiv(rows, tile_rows),)  # partial final block is masked by Pallas
    n = rows * _LANE
    return pl.pallas_call(
        _log_gamma_kernel,
        out_shape=jax.ShapeDtypeStruct((rows, _LANE), jnp.float32),
        grid_spec=pltpu.PrefetchScalarGridSpec(
            num_scalar_prefetch=1,
            grid=grid,
            in_specs=[pl.BlockSpec((tile_rows, _LANE), lambda i, p: (i, 0))],
            out_specs=pl.BlockSpec((tile_rows, _LANE), lambda i, p: (i, 0)),
        ),
        compiler_params=pltpu.CompilerParams(
            dimension_semantics=("parallel",),
            vmem_limit_bytes=vmem_limit,
        ),
        cost_estimate=pl.CostEstimate(
            flops=4 * n, transcendentals=n, bytes_accessed=8 * n),
    )(params, x2d)


def log_gamma_forward(x, alpha, beta, *, use_pallas=True, tile_rows=None):
    """Log_Gamma.forward.  x: float array (any shape). alpha, beta: scalars.

    Note: the +lgamma(alpha) sign mirrors the PyTorch source exactly
    (`log_prob -= beta*x - lgamma(alpha)`); x <= 0 yields -inf/NaN like the reference.
    """
    x = jnp.asarray(x, jnp.float32)
    alpha = jnp.float32(alpha)
    beta = jnp.float32(beta)
    alpha_m1 = alpha - 1.0
    c0 = alpha * jnp.log(beta) + jax.lax.lgamma(alpha)

    def xla_path(v):
        return (c0 + alpha_m1 * jnp.log(v) - beta * v).astype(jnp.float32)

    total = int(x.size)
    if not use_pallas or total < _LANE:
        # Too small for a lane-aligned block; launch/DMA overhead would dominate anyway.
        return xla_path(x)

    cfg = _chip_config()
    params = jnp.stack([alpha_m1, beta, c0]).astype(jnp.float32)  # (3,) -> SMEM

    x_flat = x.reshape(-1)
    aligned = (total // _LANE) * _LANE
    rows = aligned // _LANE
    tr = tile_rows if tile_rows is not None else _pick_tile_rows(rows, cfg)

    if aligned == total:
        x2d = x_flat.reshape(rows, _LANE)  # free: contiguous reshape, no pad, no slice
        out = _log_gamma_pallas(x2d, params, tr, cfg["vmem_limit"])
        return out.reshape(x.shape)

    # Ragged tail (< 128 elements): Pallas on the lane-aligned prefix, XLA on the tail.
    # Avoids the two extra full HBM passes a pad-input / slice-output scheme would cost.
    x2d = x_flat[:aligned].reshape(rows, _LANE)
    out_main = _log_gamma_pallas(x2d, params, tr, cfg["vmem_limit"]).reshape(-1)
    out_tail = xla_path(x_flat[aligned:])
    return jnp.concatenate([out_main, out_tail]).reshape(x.shape)


def _reference(x, alpha, beta):
    alpha = jnp.float32(alpha)
    beta = jnp.float32(beta)
    log_prob = alpha * jnp.log(beta)
    log_prob = log_prob + (alpha - 1.0) * jnp.log(x)
    log_prob = log_prob - (beta * x - jax.lax.lgamma(alpha))
    return log_prob


if __name__ == "__main__":
    key = jax.random.PRNGKey(0)
    alpha, beta = 2.0, 2.0  # deterministic init, matching Module.__init__ defaults

    k1, k2, k3, k4 = jax.random.split(key, 4)
    # Gamma log-prob is evaluated at positive values; use uniform(0.1, 3.0).
    x_small = jax.random.uniform(k1, (2, 4, 16, 16), jnp.float32, minval=0.1, maxval=3.0)   # grid=1 path
    x_ragged = jax.random.uniform(k2, (3, 5, 17, 13), jnp.float32, minval=0.1, maxval=3.0)  # <128-elem XLA tail
    x_multi = jax.random.uniform(k3, (2, 4, 50, 128), jnp.float32, minval=0.1, maxval=3.0)  # multi-step + masked partial block
    x_big = jax.random.uniform(k4, (8, 16, 64, 64), jnp.float32, minval=0.1, maxval=3.0)    # bigger single tile

    cases = [
        (x_small, None),
        (x_ragged, None),
        (x_multi, 48),   # rows=400, tile_rows=48 -> 9 grid steps, last block partial (OOB-masked)
        (x_big, None),
    ]
    for x, tr in cases:
        out = jax.block_until_ready(log_gamma_forward(x, alpha, beta, use_pallas=True, tile_rows=tr))
        ref = _reference(x, alpha, beta)
        np.testing.assert_allclose(np.asarray(out), np.asarray(ref), rtol=1e-5, atol=1e-5)
        assert out.shape == x.shape and out.dtype == jnp.float32

    print("KERNEL_OK")
</pallas_src>

<mosaic_0001>
module attributes {stable_mosaic.version = 11 : i64} {
  func.func @_log_gamma_kernel(%arg0: i32, %arg1: memref<3xf32, #tpu.memory_space<smem>>, %arg2: memref<16x128xf32, #tpu.memory_space<vmem>>, %arg3: memref<16x128xf32, #tpu.memory_space<vmem>>) attributes {dimension_semantics = [#tpu.dimension_semantics<parallel>], iteration_bounds = array<i64: 1>, scalar_prefetch = 1 : i64, scratch_operands = 0 : i64, tpu.core_type = #tpu.core_type<tc>, window_params = [{transform_indices = @transform_0, window_bounds = array<i64: 16, 128>}, {transform_indices = @transform_1, window_bounds = array<i64: 16, 128>}]} {
    %c0 = arith.constant 0 : index
    %0 = memref.load %arg1[%c0] : memref<3xf32, #tpu.memory_space<smem>>
    %c1 = arith.constant 1 : index
    %1 = memref.load %arg1[%c1] : memref<3xf32, #tpu.memory_space<smem>>
    %c2 = arith.constant 2 : index
    %2 = memref.load %arg1[%c2] : memref<3xf32, #tpu.memory_space<smem>>
    %c0_0 = arith.constant 0 : index
    %c0_1 = arith.constant 0 : index
    %3 = vector.load %arg2[%c0_0, %c0_1] : memref<16x128xf32, #tpu.memory_space<vmem>>, vector<16x128xf32>
    %4 = math.log %3 : vector<16x128xf32>
    %5 = vector.broadcast %0 : f32 to vector<16x128xf32>
    %6 = arith.mulf %5, %4 : vector<16x128xf32>
    %7 = vector.broadcast %2 : f32 to vector<16x128xf32>
    %8 = arith.addf %7, %6 : vector<16x128xf32>
    %9 = vector.broadcast %1 : f32 to vector<16x128xf32>
    %10 = arith.mulf %9, %3 : vector<16x128xf32>
    %11 = arith.subf %8, %10 : vector<16x128xf32>
    %c0_2 = arith.constant 0 : index
    %c0_3 = arith.constant 0 : index
    %12 = vector.load %arg3[%c0_2, %c0_3] : memref<16x128xf32, #tpu.memory_space<vmem>>, vector<16x128xf32>
    tpu.vector_store %arg3[%c0_2, %c0_3], %11 {strides = array<i32>} : memref<16x128xf32, #tpu.memory_space<vmem>>, vector<16x128xf32>,
    return
  }
  func.func @transform_0(%arg0: i32, %arg1: memref<3xf32, #tpu.memory_space<smem>>) -> (i32, i32) {
    %c0_i32 = arith.constant 0 : i32
    %c0_i32_0 = arith.constant 0 : i32
    return %arg0, %c0_i32 : i32, i32
  }
  func.func @transform_1(%arg0: i32, %arg1: memref<3xf32, #tpu.memory_space<smem>>) -> (i32, i32) {
    %c0_i32 = arith.constant 0 : i32
    %c0_i32_0 = arith.constant 0 : i32
    return %arg0, %c0_i32 : i32, i32
  }
}

</mosaic_0001>

<bundles_post_ra>
// kernel: tpu_custom_call.1
= control target key start
LH: loop header
LB: loop body
LE: loop exit
PB: predicated region body
PF: predicated region fallthrough
CT: control target
= control target key end

     0   :  { %s200_s0 = inlined_call_operand.hbm [shape: f32[3], index: 0, kind: input, shape index: {}]   ;;  %s201_s1 = inlined_call_operand.hbm [shape: f32[16,128], index: 1, kind: input, shape index: {}]   ;;  %s202_s2 = inlined_call_operand.hbm [shape: f32[16,128], index: 2, kind: output, shape index: {}]  }
   0x1   :  { %s78_s11 = scalar_lea.hbm %s200_s0, 16 }
   0x2   :  { %p79_p0 = scmp.ne.s32.totalorder %s200_s0, %s78_s11  ;;  %p82_p1 = scmp.lt.u32.totalorder %s78_s11, %s200_s0 }
   0x4   :  { %p84_p2 = pnand %p82_p1, %p79_p0 }
   0x6   :  { %87 = shalt.err (!%p84_p2)  }
   0x7   :  { %s138_s16 = smov [#allocation3]  }
   0x8   :  { %8 = dma.hbm_to_smem %s200_s0, 16, %s138_s16, [#allocation2] }
   0x9   :  { %132 = dma.done.wait [#allocation2], 16 }
   0xa   :  { %133 = vsyncadd [#allocation2], 4294967280 }
   0xb   :  { %10 = sfence }
   0xc   :  { %11 = vsyncpa [#allocation5], 0 }
   0xd   :  { %12 = vsyncpa [#allocation6], 0  ;;  %s139_s19 = smov [#allocation4]   ;;  %s88_s23 = scalar_lea.hbm %s201_s1, 256 }
   0xe   :  { %s18_s20 = sshll.u32 %s139_s19, 4  ;;  %p89_p3 = scmp.ne.s32.totalorder %s201_s1, %s88_s23  ;;  %s19_s20 = int_to_ptr.vmem [resolvable:$true] %s18_s20 }
   0xf   :  { %p92_p4 = scmp.lt.u32.totalorder %s88_s23, %s201_s1 }
  0x11   :  { %p94_p5 = pnand %p92_p4, %p89_p3 }
  0x13   :  { %97 = shalt.err (!%p94_p5)
}
  0x14   :  { %s98_s0 = scalar_lea.vmem %s19_s20, 256  ;;  %p103_p7 = scmp.lt.s32.totalorder %s19_s20, %s19_s20 }
  0x15   :  { %p99_p6 = scmp.ne.s32.totalorder %s19_s20, %s98_s0  ;;  %p104_p8 = scmp.lt.s32.totalorder %s98_s0, %s98_s0 }
  0x17   :  { %p105_p9 = por %p104_p8, %p103_p7 }
  0x19   :  { %p106_p10 = pnand %p105_p9, %p99_p6 }
  0x1b   :  { %109 = shalt.err (!%p106_p10)
}
  0x1c   :  { %s140_s28 = smov 128   ;;  %s141_s29 = smov 8  }
  0x1d   :  { %24 = dma.hbm_to_vmem [thread:$0]  %s201_s1, 256, %s19_s20, [#allocation5], %s140_s28, %s140_s28, %s141_s29  }
  0x1e   :  { %134 = dma.done.wait [#allocation5], 256  }
  0x1f   :  { %135 = vsyncadd [#allocation5], 4294967040  ;;  %v31_v0 = vld [vmem:[#allocation4] sm:$0xff]  ;;  %v32_v1 = vld [vmem:[#allocation4 + $0x8] sm:$0xff]  ;;  %s28_s4 = sld [smem:[#allocation3]]  ;;  %s67_s5 = sld [smem:[#allocation3 + $0x1]] }
  0x20   :  { %74 = vlog2.f32 %v31_v0  ;;  %s68_s6 = sld [smem:[#allocation3 + $0x2]]  ;;  %s142_s1 = smov [#allocation7]  }
  0x21   :  { %76 = vlog2.f32 %v32_v1  ;;  %s55_s7 = sshll.u32 %s142_s1, 4  ;;  %s56_s7 = int_to_ptr.vmem [resolvable:$true] %s55_s7 }
  0x22   :  { %s110_s8 = scalar_lea.vmem %s56_s7, 256  ;;  %p115_p12 = scmp.lt.s32.totalorder %s56_s7, %s56_s7 }
  0x23   :  { %p111_p11 = scmp.ne.s32.totalorder %s56_s7, %s110_s8  ;;  %p116_p13 = scmp.lt.s32.totalorder %s110_s8, %s110_s8 }
  0x25   :  { %v37_v3 = vstv %s28_s4  ;;  %v43_v4 = vstv %s67_s5  ;;  %p117_p0 = por %p116_p13, %p115_p12 }
  0x26   :  { %v40_v7 = vstv %s68_s6  ;;  %v44_v10 = vmul.f32 %v43_v4, %v31_v0  ;;  %v45_v12 = vmul.f32 %v43_v4, %v32_v1 }
  0x27   :  { %p118_p1 = pnand %p117_p0, %p111_p11 }
  0x2a   :  { %v75_v2 = vpop.eup %74 }
  0x2b   :  { %v77_v5 = vpop.eup %76  ;;  %v34_v6 = vmul.f32 0.6931472, %v75_v2 }
  0x2c   :  { %v36_v8 = vmul.f32 0.6931472, %v77_v5 }
  0x2d   :  { %v38_v9 = vmul.f32 %v37_v3, %v34_v6 }
  0x2e   :  { %v39_v11 = vmul.f32 %v37_v3, %v36_v8 }
  0x2f   :  { %v41_v13 = vadd.f32 %v40_v7, %v38_v9 }
  0x30   :  { %v42_v14 = vadd.f32 %v40_v7, %v39_v11 }
  0x31   :  { %v46_v15 = vsub.f32 %v41_v13, %v44_v10 }
  0x32   :  { %v47_v16 = vsub.f32 %v42_v14, %v45_v12 }
  0x33   :  { %48 = vst [vmem:[#allocation7] sm:$0xff] %v46_v15 }
  0x34   :  { %49 = vst [vmem:[#allocation7 + $0x8] sm:$0xff] %v47_v16 }
  0x35   :  { %121 = shalt.err (!%p118_p1)
}
  0x36   :  { %s122_s11 = scalar_lea.hbm %s202_s2, 256 }
  0x37   :  { %p123_p2 = scmp.ne.s32.totalorder %s202_s2, %s122_s11  ;;  %p126_p3 = scmp.lt.u32.totalorder %s122_s11, %s202_s2 }
  0x39   :  { %p128_p4 = pnand %p126_p3, %p123_p2 }
  0x3b   :  { %131 = shalt.err (!%p128_p4)
}
  0x3c   :  { %61 = dma.vmem_to_hbm [thread:$0]  %s56_s7, 256, %s202_s2, [#allocation6], %s140_s28, %s140_s28, %s141_s29  }
  0x3d   :  { %136 = dma.done.wait [#allocation6], 256  }
  0x3e   :  { %137 = vsyncadd [#allocation6], 4294967040 }
  0x3f   :  { %65 = vsyncpa [#allocation5], 1 }
  0x40   :  { %66 = vsyncpa [#allocation6], 1 }

</bundles_post_ra>
